<compile_context>
chip_gen: v5e
topology: v5e:2x2
jax: 0.10.0
libtpu: 0.0.40
codegen_flags: <defaults>
</compile_context>

<pallas_src>
import functools

import jax
import jax.numpy as jnp
from jax.experimental import pallas as pl
from jax.experimental.pallas import tpu as pltpu

TILE_ROWS = 256          # row-tile ceiling (matches v6e/v7x MXU M-dim)
LANE = 128
_KERNEL_F32_TEMPS = 6    # ~count of full-width (tn, Vp) f32 temporaries in-kernel


def _round_up(x, m):
    return (x + m - 1) // m * m


def _vmem_budget_bytes():
    """Generation-aware scoped-VMEM request: ~85% of physical per-core VMEM.

    v5e/v6e: 128 MiB -> ~108 MiB;  v7x: 64 MiB/TC -> ~54 MiB (headroom for
    compiler-internal scratch). Falls back conservatively off-TPU."""
    try:
        cap = int(pltpu.get_tpu_info().vmem_capacity_bytes)
    except Exception:
        cap = 64 * 1024 * 1024
    return int(cap * 0.85)


def make_fused_head_weight(w_out, w_frame, w_att):
    """Build the (H, Vp+NFp+NAp) bf16 fused head weight ONCE (hoisted out of
    the training step); each section is padded to a 128-lane boundary."""
    def pad_cols(x, to):
        return x if x.shape[1] == to else jnp.pad(x, ((0, 0), (0, to - x.shape[1])))
    V, NF, NA = w_out.shape[1], w_frame.shape[1], w_att.shape[1]
    Vp, NFp, NAp = _round_up(V, LANE), _round_up(NF, LANE), _round_up(NA, LANE)
    return jnp.concatenate(
        [pad_cols(w_out.astype(jnp.bfloat16), Vp),
         pad_cols(w_frame.astype(jnp.bfloat16), NFp),
         pad_cols(w_att.astype(jnp.bfloat16), NAp)], axis=1)


def _lm_crit_kernel(hidden_ref, wfused_ref, fsup_ref, asup_ref, tgt_ref, mask_ref,
                    *out_refs, v, nf, na, vp, nfp, nap, write_logp):
    if write_logp:
        logp_ref, psum_ref = out_refs
    else:
        (psum_ref,) = out_refs

    h = hidden_ref[...]                                          # (tn, H) bf16
    mask = mask_ref[...]                                         # (tn, 1) f32

    # ---- one fused MXU pass over all three heads (bf16 in, f32 acc) --------
    scores = jnp.dot(h, wfused_ref[...],
                     preferred_element_type=jnp.float32)         # (tn, vp+nfp+nap)

    # ---- language-model head: fused log_softmax + algebraic masked NLL -----
    logits = scores[:, :vp]
    vlane = jax.lax.broadcasted_iota(jnp.int32, logits.shape, 1)  # built once,
    if v != vp:                                                   # reused below
        logits = jnp.where(vlane < v, logits, jnp.float32(-1e30))
    m = jnp.max(logits, axis=-1, keepdims=True)
    shifted = logits - m                                          # one full pass
    e = jnp.exp(shifted)                                          # EUP slot
    log_s = jnp.log(jnp.sum(e, axis=-1, keepdims=True))
    if write_logp:
        logp_ref[...] = (shifted - log_s).astype(logp_ref.dtype)  # bf16 store

    tgt = tgt_ref[...]                                            # (tn, 1) i32
    shifted_tgt = jnp.sum(jnp.where(vlane == tgt, shifted, 0.0),
                          axis=-1, keepdims=True)
    nll = (log_s - shifted_tgt) * mask                            # lse - logit[t]

    # ---- frame / spatial attention heads: masked softmax + masked SSE ------
    def masked_softmax_sse(score, sup, valid_n, padded_n):
        if valid_n != padded_n:
            lane = jax.lax.broadcasted_iota(jnp.int32, score.shape, 1)
            score = jnp.where(lane < valid_n, score, jnp.float32(-1e30))
        ex = jnp.exp(score - jnp.max(score, axis=-1, keepdims=True))
        w = ex / jnp.sum(ex, axis=-1, keepdims=True)
        d = w - sup
        return jnp.sum(d * d, axis=-1, keepdims=True)

    fsse = masked_softmax_sse(scores[:, vp:vp + nfp], fsup_ref[...], nf, nfp) * mask
    asse = masked_softmax_sse(scores[:, vp + nfp:vp + nfp + nap], asup_ref[...],
                              na, nap) * mask

    # ---- lane-dense per-block partial sums (lane0=nll, lane1=frame, lane2=att)
    nll_sum = jnp.sum(nll)
    f_sum = jnp.sum(fsse)
    a_sum = jnp.sum(asse)
    lane = jax.lax.broadcasted_iota(jnp.int32, psum_ref.shape, 1)
    sub = jax.lax.broadcasted_iota(jnp.int32, psum_ref.shape, 0)
    row0 = sub == 0
    vals = jnp.where(row0 & (lane == 0), nll_sum, jnp.float32(0.0))
    vals = jnp.where(row0 & (lane == 1), f_sum, vals)
    vals = jnp.where(row0 & (lane == 2), a_sum, vals)
    psum_ref[...] = vals


def lm_crit_pallas(hidden, w_fused, frame_sup, att_sup, tgt, mask, *,
                   v, nf, na, tile_rows=TILE_ROWS, return_outputs=True):
    N, H = hidden.shape
    Vp, NFp, NAp = _round_up(v, LANE), _round_up(nf, LANE), _round_up(na, LANE)
    CT = Vp + NFp + NAp
    assert w_fused.shape == (H, CT) and w_fused.dtype == jnp.bfloat16

    # --- generation-aware row-tile sizing ------------------------------------
    budget = _vmem_budget_bytes()
    fixed = H * CT * 2 + 2 * 8 * LANE * 4         # Buffered(1) weight + psum out
    per_row = (2 * H * 2                          # hidden bf16 (double-buffered)
               + 2 * (NFp + NAp) * 4              # frame/att supervision (f32)
               + 2 * 2 * 4                        # tgt + mask columns
               + _KERNEL_F32_TEMPS * Vp * 4)      # in-kernel f32 temporaries
    if return_outputs:
        per_row += 2 * Vp * 2                     # bf16 log-prob out (dbl-buf)
    tn_cap = max(16, int((budget - fixed) // per_row))
    tn = min(int(tile_rows), tn_cap)
    tn = max(16, tn // 16 * 16)                   # bf16 sublane packing = 16 rows
    tn = min(tn, _round_up(N, 16))
    Np = _round_up(N, tn)
    G = Np // tn

    def pad_rows(x):
        return x if Np == N else jnp.pad(x, ((0, Np - N), (0, 0)))

    def pad_cols(x, to):
        return x if x.shape[1] == to else jnp.pad(x, ((0, 0), (0, to - x.shape[1])))

    # bf16 into the MXU; post-matmul elementwise math stays f32 (v5e-safe).
    hidden_p = pad_rows(hidden).astype(jnp.bfloat16)
    fsup_p = pad_rows(pad_cols(frame_sup.astype(jnp.float32), NFp))
    asup_p = pad_rows(pad_cols(att_sup.astype(jnp.float32), NAp))
    tgt_p = pad_rows(tgt.astype(jnp.int32))
    mask_p = pad_rows(mask.astype(jnp.float32))

    row = lambda i: (i, 0)
    full = lambda i: (0, 0)

    kernel = functools.partial(_lm_crit_kernel,
                               v=v, nf=nf, na=na, vp=Vp, nfp=NFp, nap=NAp,
                               write_logp=return_outputs)

    in_specs = [
        pl.BlockSpec((tn, H), row),
        # constant block (index_map always (0,0)) -> single-buffer the resident
        # fused weight: halves its VMEM footprint, no per-step re-DMA.
        pl.BlockSpec((H, CT), full, pipeline_mode=pl.Buffered(1)),
        pl.BlockSpec((tn, NFp), row),
        pl.BlockSpec((tn, NAp), row),
        pl.BlockSpec((tn, 1), row),
        pl.BlockSpec((tn, 1), row),
    ]
    psum_shape = jax.ShapeDtypeStruct((G * 8, LANE), jnp.float32)
    psum_spec = pl.BlockSpec((8, LANE), row)

    if return_outputs:
        out_shape = (jax.ShapeDtypeStruct((Np, Vp), jnp.bfloat16), psum_shape)
        out_specs = [pl.BlockSpec((tn, Vp), row), psum_spec]
    else:
        out_shape = psum_shape
        out_specs = psum_spec

    # TODO(synk): for very large vocabularies (Vp-sized temporaries no longer
    # fitting even at tn=16) add a second "arbitrary" grid axis over vocab
    # tiles with an online log-sum-exp so the fused weight streams instead of
    # staying resident.
    result = pl.pallas_call(
        kernel,
        out_shape=out_shape,
        grid_spec=pltpu.PrefetchScalarGridSpec(
            num_scalar_prefetch=0,
            grid=(G,),
            in_specs=in_specs,
            out_specs=out_specs,
        ),
        compiler_params=pltpu.CompilerParams(
            dimension_semantics=("parallel",),            # row axis shards TCs
            vmem_limit_bytes=int(budget)),
    )(hidden_p, w_fused, fsup_p, asup_p, tgt_p, mask_p)

    if return_outputs:
        logp_p, psums = result
        # Avoid the extra HBM round-trip of a slice copy whenever no padding
        # was actually introduced.
        logp = logp_p if (Np == N and Vp == v) else logp_p[:N, :v]
    else:
        psums = result
        logp = None

    totals = jnp.sum(psums, axis=0)                       # (128,)
    return logp, totals[0], totals[1], totals[2]


def init_params(key, vocab, hidden, fc_dim, att_dim, n_frames, n_att):
    ks = jax.random.split(key, 6)
    s = lambda k, shape: (0.1 * jax.random.normal(k, shape)).astype(jnp.float32)
    params = {
        "embed":   s(ks[0], (vocab, hidden)),
        "w_fc":    s(ks[1], (fc_dim, hidden)),
        "w_attf":  s(ks[2], (att_dim, hidden)),
        "w_out":   s(ks[3], (hidden, vocab)),
        "w_frame": s(ks[4], (hidden, n_frames)),
        "w_att":   s(ks[5], (hidden, n_att)),
    }
    # Hoisted: fused bf16 head weight built once, not per training step.
    params["w_fused"] = make_fused_head_weight(
        params["w_out"], params["w_frame"], params["w_att"])
    return params


def loss_wrapper_forward(params, opt, fc_feats, att_feats, labels,
                         short_description, masks, short_mask, att_masks,
                         gts, gt_indices, sc_flag, struc_flag,
                         frame_surpervise, att_surpervise, probs,
                         return_outputs=True):
    # TODO(synk): struc_flag / sc_flag branches need autoregressive sampling +
    # CIDEr self-critical reward (StructureLosses / RewardCriterion) -> no
    # clean Pallas equivalent; only the supervised XE branch is implemented.
    assert (not sc_flag) and (not struc_flag)
    # TODO(synk): the (ada_frame_out, ada_att_out, pre_probs vs probs) term of
    # the custom criterion is not defined in the provided snippet; omitted.

    B, Lp1 = labels.shape
    L = Lp1 - 1
    in_tok = labels[:, :-1]                                   # (B, L)
    tgt = labels[:, 1:]                                       # (B, L)
    msk = masks[:, 1:]                                        # (B, L)

    # --- synthetic captioning model trunk (plain-JAX glue) ---
    tok_emb = jnp.take(params["embed"], in_tok, axis=0)       # (B, L, H)
    fc_ctx = fc_feats @ params["w_fc"]                        # (B, H)
    att_ctx = jnp.mean(att_feats, axis=1) @ params["w_attf"]  # (B, H)
    hidden = tok_emb + (fc_ctx + att_ctx)[:, None, :]         # (B, L, H)

    N = B * L
    hidden_f = hidden.reshape(N, -1)
    frame_sup_f = frame_surpervise.reshape(N, -1)
    att_sup_f = att_surpervise.reshape(N, -1)
    tgt_f = tgt.reshape(N, 1)
    msk_f = msk.reshape(N, 1).astype(jnp.float32)

    w_fused = params.get("w_fused")
    if w_fused is None:   # fallback if the caller did not pre-fuse
        w_fused = make_fused_head_weight(params["w_out"], params["w_frame"],
                                         params["w_att"])

    logp, lang_sum, frame_sum, att_sum = lm_crit_pallas(
        hidden_f, w_fused, frame_sup_f, att_sup_f, tgt_f, msk_f,
        v=params["w_out"].shape[1], nf=params["w_frame"].shape[1],
        na=params["w_att"].shape[1], return_outputs=return_outputs)

    mask_sum = jnp.maximum(jnp.sum(msk_f), 1.0)               # all-padding guard
    lang_loss = lang_sum / mask_sum
    frame_loss = frame_sum / mask_sum
    att_loss = att_sum / mask_sum
    loss = (lang_loss
            + opt["frame_loss_weight"] * frame_loss
            + opt["att_loss_weight"] * att_loss)

    out = {
        "loss": loss,
        "lang_loss": lang_loss,
        "frame_loss": frame_loss,
        "att_loss": att_loss,
    }
    if return_outputs:
        out["outputs"] = logp.reshape(B, L, -1)               # bf16 log-probs
    return out


def _reference(params, opt, fc_feats, att_feats, labels, masks,
               frame_surpervise, att_surpervise):
    # pure-JAX reference; applies the same bf16 quantization of the matmul
    # inputs as the kernel (MXU path) so tolerances stay tight.
    in_tok, tgt, msk = labels[:, :-1], labels[:, 1:], masks[:, 1:]
    tok_emb = jnp.take(params["embed"], in_tok, axis=0)
    ctx = fc_feats @ params["w_fc"] + jnp.mean(att_feats, axis=1) @ params["w_attf"]
    hidden = tok_emb + ctx[:, None, :]
    q = lambda x: x.astype(jnp.bfloat16).astype(jnp.float32)
    h = q(hidden)
    logp = jax.nn.log_softmax(h @ q(params["w_out"]), axis=-1)
    nll = -jnp.take_along_axis(logp, tgt[..., None], axis=-1)[..., 0]
    lang = jnp.sum(nll * msk) / jnp.sum(msk)
    fw = jax.nn.softmax(h @ q(params["w_frame"]), axis=-1)
    fl = jnp.sum(jnp.sum((fw - frame_surpervise) ** 2, -1) * msk) / jnp.sum(msk)
    aw = jax.nn.softmax(h @ q(params["w_att"]), axis=-1)
    al = jnp.sum(jnp.sum((aw - att_surpervise) ** 2, -1) * msk) / jnp.sum(msk)
    loss = lang + opt["frame_loss_weight"] * fl + opt["att_loss_weight"] * al
    return loss, lang, fl, al, logp


if __name__ == "__main__":
    B, L, H, V = 2, 8, 32, 128
    FC_DIM, ATT_DIM = 32, 32
    N_FRAMES, N_ATT = 16, 16
    N_ATT_FEAT = 16

    key = jax.random.PRNGKey(0)
    kp, k1, k2, k3, k4, k5, k6 = jax.random.split(key, 7)
    params = init_params(kp, V, H, FC_DIM, ATT_DIM, N_FRAMES, N_ATT)

    fc_feats = jax.random.normal(k1, (B, FC_DIM), jnp.float32)
    att_feats = jax.random.normal(k2, (B, N_ATT_FEAT, ATT_DIM), jnp.float32)
    labels = jax.random.randint(k3, (B, L + 1), 0, V, dtype=jnp.int32)
    masks = (jax.random.uniform(k4, (B, L + 1)) > 0.2).astype(jnp.float32)
    frame_surpervise = jax.nn.softmax(
        jax.random.normal(k5, (B, L, N_FRAMES), jnp.float32), axis=-1)
    att_surpervise = jax.nn.softmax(
        jax.random.normal(k6, (B, L, N_ATT), jnp.float32), axis=-1)

    short_description = jnp.zeros((B, 20), jnp.int32)
    short_mask = jnp.ones((B, 20), jnp.float32)
    att_masks = jnp.ones((B, N_ATT_FEAT), jnp.float32)
    probs = jnp.ones((B, L), jnp.float32)
    gts, gt_indices = None, None

    opt = {"frame_loss_weight": 1.0, "att_loss_weight": 1.0}

    out = loss_wrapper_forward(params, opt, fc_feats, att_feats, labels,
                               short_description, masks, short_mask, att_masks,
                               gts, gt_indices, False, False,
                               frame_surpervise, att_surpervise, probs)
    jax.block_until_ready(out["loss"])

    # also exercise the losses-only path (no (N, V) log-prob writeback)
    out_lite = loss_wrapper_forward(params, opt, fc_feats, att_feats, labels,
                                    short_description, masks, short_mask,
                                    att_masks, gts, gt_indices, False, False,
                                    frame_surpervise, att_surpervise, probs,
                                    return_outputs=False)
    jax.block_until_ready(out_lite["loss"])

    ref_loss, ref_lang, ref_fl, ref_al, ref_logp = _reference(
        params, opt, fc_feats, att_feats, labels, masks,
        frame_surpervise, att_surpervise)

    assert jnp.allclose(out["loss"], ref_loss, atol=2e-3, rtol=2e-3)
    assert jnp.allclose(out["lang_loss"], ref_lang, atol=2e-3, rtol=2e-3)
    assert jnp.allclose(out["frame_loss"], ref_fl, atol=2e-3, rtol=2e-3)
    assert jnp.allclose(out["att_loss"], ref_al, atol=2e-3, rtol=2e-3)
    assert jnp.allclose(out_lite["loss"], ref_loss, atol=2e-3, rtol=2e-3)
    # outputs are stored in bf16 -> compare with bf16-scale tolerance
    assert jnp.allclose(out["outputs"].astype(jnp.float32), ref_logp,
                        atol=5e-2, rtol=2e-2)

    print("KERNEL_OK")
</pallas_src>

<mosaic_0001>
module attributes {stable_mosaic.version = 11 : i64} {
  func.func @_lm_crit_kernel(%arg0: i32, %arg1: memref<16x32xbf16, #tpu.memory_space<vmem>>, %arg2: memref<32x384xbf16, #tpu.memory_space<vmem>>, %arg3: memref<16x128xf32, #tpu.memory_space<vmem>>, %arg4: memref<16x128xf32, #tpu.memory_space<vmem>>, %arg5: memref<16x1xi32, #tpu.memory_space<vmem>>, %arg6: memref<16x1xf32, #tpu.memory_space<vmem>>, %arg7: memref<16x128xbf16, #tpu.memory_space<vmem>>, %arg8: memref<8x128xf32, #tpu.memory_space<vmem>>) attributes {dimension_semantics = [#tpu.dimension_semantics<parallel>], iteration_bounds = array<i64: 1>, scalar_prefetch = 0 : i64, scratch_operands = 0 : i64, tpu.core_type = #tpu.core_type<tc>, window_params = [{transform_indices = @transform_0, window_bounds = array<i64: 16, 32>}, {pipeline_mode = #tpu.pipeline_mode<synchronous>, transform_indices = @transform_1, window_bounds = array<i64: 32, 384>}, {transform_indices = @transform_2, window_bounds = array<i64: 16, 128>}, {transform_indices = @transform_3, window_bounds = array<i64: 16, 128>}, {transform_indices = @transform_4, window_bounds = array<i64: 16, 1>}, {transform_indices = @transform_5, window_bounds = array<i64: 16, 1>}, {transform_indices = @transform_6, window_bounds = array<i64: 16, 128>}, {transform_indices = @transform_7, window_bounds = array<i64: 8, 128>}]} {
    %c0 = arith.constant 0 : index
    %c0_0 = arith.constant 0 : index
    %0 = vector.load %arg1[%c0, %c0_0] : memref<16x32xbf16, #tpu.memory_space<vmem>>, vector<16x32xbf16>
    %c0_1 = arith.constant 0 : index
    %c0_2 = arith.constant 0 : index
    %1 = vector.load %arg6[%c0_1, %c0_2] : memref<16x1xf32, #tpu.memory_space<vmem>>, vector<16x1xf32>
    %c0_3 = arith.constant 0 : index
    %c0_4 = arith.constant 0 : index
    %2 = vector.load %arg2[%c0_3, %c0_4] : memref<32x384xbf16, #tpu.memory_space<vmem>>, vector<32x384xbf16>
    %cst = arith.constant dense<0.000000e+00> : vector<16x384xf32>
    %3 = tpu.matmul %0, %2, %cst {dimension_numbers = #tpu.dot_dimension_numbers<[1], [0], [0], [1], [0, 0, 1, 1], [], []>} : vector<16x32xbf16>, vector<32x384xbf16>, vector<16x384xf32> -> vector<16x384xf32>
    %4 = vector.extract_strided_slice %3 {offsets = [0, 0], sizes = [16, 128], strides = [1, 1]} : vector<16x384xf32> to vector<16x128xf32>
    %5 = tpu.iota {dimensions = array<i32: 1>} : vector<16x128xi32>
    %cst_5 = arith.constant dense<0xFF800000> : vector<16xf32>
    %6 = vector.multi_reduction <maximumf>, %4, %cst_5 [1] : vector<16x128xf32> to vector<16xf32>
    %7 = vector.shape_cast %6 : vector<16xf32> to vector<16x1xf32>
    %8 = vector.broadcast %7 : vector<16x1xf32> to vector<16x128xf32>
    %9 = arith.subf %4, %8 : vector<16x128xf32>
    %10 = math.exp %9 : vector<16x128xf32>
    %cst_6 = arith.constant dense<0.000000e+00> : vector<16xf32>
    %11 = vector.multi_reduction <add>, %10, %cst_6 [1] : vector<16x128xf32> to vector<16xf32>
    %12 = vector.shape_cast %11 : vector<16xf32> to vector<16x1xf32>
    %13 = math.log %12 : vector<16x1xf32>
    %14 = vector.broadcast %13 : vector<16x1xf32> to vector<16x128xf32>
    %15 = arith.subf %9, %14 : vector<16x128xf32>
    %16 = arith.truncf %15 : vector<16x128xf32> to vector<16x128xbf16>
    %c0_7 = arith.constant 0 : index
    %c0_8 = arith.constant 0 : index
    %17 = vector.load %arg7[%c0_7, %c0_8] : memref<16x128xbf16, #tpu.memory_space<vmem>>, vector<16x128xbf16>
    tpu.vector_store %arg7[%c0_7, %c0_8], %16 {strides = array<i32>} : memref<16x128xbf16, #tpu.memory_space<vmem>>, vector<16x128xbf16>,
    %c0_9 = arith.constant 0 : index
    %c0_10 = arith.constant 0 : index
    %18 = vector.load %arg5[%c0_9, %c0_10] : memref<16x1xi32, #tpu.memory_space<vmem>>, vector<16x1xi32>
    %19 = vector.broadcast %18 : vector<16x1xi32> to vector<16x128xi32>
    %20 = arith.cmpi eq, %5, %19 : vector<16x128xi32>
    %cst_11 = arith.constant 0.000000e+00 : f32
    %21 = vector.broadcast %cst_11 : f32 to vector<16x128xf32>
    %22 = arith.select %20, %9, %21 : vector<16x128xi1>, vector<16x128xf32>
    %cst_12 = arith.constant dense<0.000000e+00> : vector<16xf32>
    %23 = vector.multi_reduction <add>, %22, %cst_12 [1] : vector<16x128xf32> to vector<16xf32>
    %24 = vector.shape_cast %23 : vector<16xf32> to vector<16x1xf32>
    %25 = arith.subf %13, %24 : vector<16x1xf32>
    %26 = arith.mulf %25, %1 : vector<16x1xf32>
    %27 = vector.extract_strided_slice %3 {offsets = [0, 128], sizes = [16, 128], strides = [1, 1]} : vector<16x384xf32> to vector<16x128xf32>
    %c0_13 = arith.constant 0 : index
    %c0_14 = arith.constant 0 : index
    %28 = vector.load %arg3[%c0_13, %c0_14] : memref<16x128xf32, #tpu.memory_space<vmem>>, vector<16x128xf32>
    %29 = tpu.iota {dimensions = array<i32: 1>} : vector<16x128xi32>
    %c16_i32 = arith.constant 16 : i32
    %30 = vector.broadcast %c16_i32 : i32 to vector<16x128xi32>
    %31 = arith.cmpi slt, %29, %30 : vector<16x128xi32>
    %cst_15 = arith.constant -1.000000e+30 : f32
    %32 = vector.broadcast %cst_15 : f32 to vector<16x128xf32>
    %33 = arith.select %31, %27, %32 : vector<16x128xi1>, vector<16x128xf32>
    %cst_16 = arith.constant dense<0xFF800000> : vector<16xf32>
    %34 = vector.multi_reduction <maximumf>, %33, %cst_16 [1] : vector<16x128xf32> to vector<16xf32>
    %35 = vector.shape_cast %34 : vector<16xf32> to vector<16x1xf32>
    %36 = vector.broadcast %35 : vector<16x1xf32> to vector<16x128xf32>
    %37 = arith.subf %33, %36 : vector<16x128xf32>
    %38 = math.exp %37 : vector<16x128xf32>
    %cst_17 = arith.constant dense<0.000000e+00> : vector<16xf32>
    %39 = vector.multi_reduction <add>, %38, %cst_17 [1] : vector<16x128xf32> to vector<16xf32>
    %40 = vector.shape_cast %39 : vector<16xf32> to vector<16x1xf32>
    %41 = vector.broadcast %40 : vector<16x1xf32> to vector<16x128xf32>
    %42 = arith.divf %38, %41 : vector<16x128xf32>
    %43 = arith.subf %42, %28 : vector<16x128xf32>
    %44 = arith.mulf %43, %43 : vector<16x128xf32>
    %cst_18 = arith.constant dense<0.000000e+00> : vector<16xf32>
    %45 = vector.multi_reduction <add>, %44, %cst_18 [1] : vector<16x128xf32> to vector<16xf32>
    %46 = vector.shape_cast %45 : vector<16xf32> to vector<16x1xf32>
    %47 = arith.mulf %46, %1 : vector<16x1xf32>
    %48 = vector.extract_strided_slice %3 {offsets = [0, 256], sizes = [16, 128], strides = [1, 1]} : vector<16x384xf32> to vector<16x128xf32>
    %c0_19 = arith.constant 0 : index
    %c0_20 = arith.constant 0 : index
    %49 = vector.load %arg4[%c0_19, %c0_20] : memref<16x128xf32, #tpu.memory_space<vmem>>, vector<16x128xf32>
    %50 = tpu.iota {dimensions = array<i32: 1>} : vector<16x128xi32>
    %c16_i32_21 = arith.constant 16 : i32
    %51 = vector.broadcast %c16_i32_21 : i32 to vector<16x128xi32>
    %52 = arith.cmpi slt, %50, %51 : vector<16x128xi32>
    %cst_22 = arith.constant -1.000000e+30 : f32
    %53 = vector.broadcast %cst_22 : f32 to vector<16x128xf32>
    %54 = arith.select %52, %48, %53 : vector<16x128xi1>, vector<16x128xf32>
    %cst_23 = arith.constant dense<0xFF800000> : vector<16xf32>
    %55 = vector.multi_reduction <maximumf>, %54, %cst_23 [1] : vector<16x128xf32> to vector<16xf32>
    %56 = vector.shape_cast %55 : vector<16xf32> to vector<16x1xf32>
    %57 = vector.broadcast %56 : vector<16x1xf32> to vector<16x128xf32>
    %58 = arith.subf %54, %57 : vector<16x128xf32>
    %59 = math.exp %58 : vector<16x128xf32>
    %cst_24 = arith.constant dense<0.000000e+00> : vector<16xf32>
    %60 = vector.multi_reduction <add>, %59, %cst_24 [1] : vector<16x128xf32> to vector<16xf32>
    %61 = vector.shape_cast %60 : vector<16xf32> to vector<16x1xf32>
    %62 = vector.broadcast %61 : vector<16x1xf32> to vector<16x128xf32>
    %63 = arith.divf %59, %62 : vector<16x128xf32>
    %64 = arith.subf %63, %49 : vector<16x128xf32>
    %65 = arith.mulf %64, %64 : vector<16x128xf32>
    %cst_25 = arith.constant dense<0.000000e+00> : vector<16xf32>
    %66 = vector.multi_reduction <add>, %65, %cst_25 [1] : vector<16x128xf32> to vector<16xf32>
    %67 = vector.shape_cast %66 : vector<16xf32> to vector<16x1xf32>
    %68 = arith.mulf %67, %1 : vector<16x1xf32>
    %69 = vector.shape_cast %26 : vector<16x1xf32> to vector<1x16x1xf32>
    %cst_26 = arith.constant dense<0.000000e+00> : vector<1xf32>
    %70 = vector.multi_reduction <add>, %69, %cst_26 [1, 2] : vector<1x16x1xf32> to vector<1xf32>
    %71 = vector.shape_cast %70 : vector<1xf32> to vector<1x1x1xf32>
    %72 = vector.extract %71[0, 0, 0] : f32 from vector<1x1x1xf32>
    %73 = vector.shape_cast %47 : vector<16x1xf32> to vector<1x16x1xf32>
    %cst_27 = arith.constant dense<0.000000e+00> : vector<1xf32>
    %74 = vector.multi_reduction <add>, %73, %cst_27 [1, 2] : vector<1x16x1xf32> to vector<1xf32>
    %75 = vector.shape_cast %74 : vector<1xf32> to vector<1x1x1xf32>
    %76 = vector.extract %75[0, 0, 0] : f32 from vector<1x1x1xf32>
    %77 = vector.shape_cast %68 : vector<16x1xf32> to vector<1x16x1xf32>
    %cst_28 = arith.constant dense<0.000000e+00> : vector<1xf32>
    %78 = vector.multi_reduction <add>, %77, %cst_28 [1, 2] : vector<1x16x1xf32> to vector<1xf32>
    %79 = vector.shape_cast %78 : vector<1xf32> to vector<1x1x1xf32>
    %80 = vector.extract %79[0, 0, 0] : f32 from vector<1x1x1xf32>
    %81 = tpu.iota {dimensions = array<i32: 1>} : vector<8x128xi32>
    %82 = tpu.iota {dimensions = array<i32: 0>} : vector<8x128xi32>
    %c0_i32 = arith.constant 0 : i32
    %83 = vector.broadcast %c0_i32 : i32 to vector<8x128xi32>
    %84 = arith.cmpi eq, %82, %83 : vector<8x128xi32>
    %c0_i32_29 = arith.constant 0 : i32
    %85 = vector.broadcast %c0_i32_29 : i32 to vector<8x128xi32>
    %86 = arith.cmpi eq, %81, %85 : vector<8x128xi32>
    %87 = arith.andi %84, %86 : vector<8x128xi1>
    %cst_30 = arith.constant 0.000000e+00 : f32
    %88 = vector.broadcast %72 : f32 to vector<8x128xf32>
    %89 = vector.broadcast %cst_30 : f32 to vector<8x128xf32>
    %90 = arith.select %87, %88, %89 : vector<8x128xi1>, vector<8x128xf32>
    %c1_i32 = arith.constant 1 : i32
    %91 = vector.broadcast %c1_i32 : i32 to vector<8x128xi32>
    %92 = arith.cmpi eq, %81, %91 : vector<8x128xi32>
    %93 = arith.andi %84, %92 : vector<8x128xi1>
    %94 = vector.broadcast %76 : f32 to vector<8x128xf32>
    %95 = arith.select %93, %94, %90 : vector<8x128xi1>, vector<8x128xf32>
    %c2_i32 = arith.constant 2 : i32
    %96 = vector.broadcast %c2_i32 : i32 to vector<8x128xi32>
    %97 = arith.cmpi eq, %81, %96 : vector<8x128xi32>
    %98 = arith.andi %84, %97 : vector<8x128xi1>
    %99 = vector.broadcast %80 : f32 to vector<8x128xf32>
    %100 = arith.select %98, %99, %95 : vector<8x128xi1>, vector<8x128xf32>
    %c0_31 = arith.constant 0 : index
    %c0_32 = arith.constant 0 : index
    %101 = vector.load %arg8[%c0_31, %c0_32] : memref<8x128xf32, #tpu.memory_space<vmem>>, vector<8x128xf32>
    tpu.vector_store %arg8[%c0_31, %c0_32], %100 {strides = array<i32>} : memref<8x128xf32, #tpu.memory_space<vmem>>, vector<8x128xf32>,
    return
  }
  func.func @transform_0(%arg0: i32) -> (i32, i32) {
    %c0_i32 = arith.constant 0 : i32
    %c0_i32_0 = arith.constant 0 : i32
    return %arg0, %c0_i32 : i32, i32
  }
  func.func @transform_1(%arg0: i32) -> (i32, i32) {
    %c0_i32 = arith.constant 0 : i32
    %c0_i32_0 = arith.constant 0 : i32
    %c0_i32_1 = arith.constant 0 : i32
    return %c0_i32, %c0_i32_0 : i32, i32
  }
  func.func @transform_2(%arg0: i32) -> (i32, i32) {
    %c0_i32 = arith.constant 0 : i32
    %c0_i32_0 = arith.constant 0 : i32
    return %arg0, %c0_i32 : i32, i32
  }
  func.func @transform_3(%arg0: i32) -> (i32, i32) {
    %c0_i32 = arith.constant 0 : i32
    %c0_i32_0 = arith.constant 0 : i32
    return %arg0, %c0_i32 : i32, i32
  }
  func.func @transform_4(%arg0: i32) -> (i32, i32) {
    %c0_i32 = arith.constant 0 : i32
    %c0_i32_0 = arith.constant 0 : i32
    return %arg0, %c0_i32 : i32, i32
  }
  func.func @transform_5(%arg0: i32) -> (i32, i32) {
    %c0_i32 = arith.constant 0 : i32
    %c0_i32_0 = arith.constant 0 : i32
    return %arg0, %c0_i32 : i32, i32
  }
  func.func @transform_6(%arg0: i32) -> (i32, i32) {
    %c0_i32 = arith.constant 0 : i32
    %c0_i32_0 = arith.constant 0 : i32
    return %arg0, %c0_i32 : i32, i32
  }
  func.func @transform_7(%arg0: i32) -> (i32, i32) {
    %c0_i32 = arith.constant 0 : i32
    %c0_i32_0 = arith.constant 0 : i32
    return %arg0, %c0_i32 : i32, i32
  }
}

</mosaic_0001>

<bundles_post_ra>
// kernel: tpu_custom_call.1
= control target key start
LH: loop header
LB: loop body
LE: loop exit
PB: predicated region body
PF: predicated region fallthrough
CT: control target
= control target key end

     0   :  { %13 = vsyncpa [#allocation3], 0  ;;  %s743_s0 = inlined_call_operand.hbm [shape: bf16[16,32], index: 0, kind: input, shape index: {}]   ;;  %s744_s1 = inlined_call_operand.hbm [shape: bf16[32,384], index: 1, kind: input, shape index: {}]   ;;  %s745_s2 = inlined_call_operand.vmem [shape: f32[16,128], index: 2, kind: input, shape index: {}]   ;;  %s746_s3 = inlined_call_operand.vmem [shape: f32[16,128], index: 3, kind: input, shape index: {}]   ;;  %s747_s4 = inlined_call_operand.vmem [shape: s32[16,1], index: 4, kind: input, shape index: {}]   ;;  %s748_s5 = inlined_call_operand.vmem [shape: f32[16,1], index: 5, kind: input, shape index: {}]   ;;  %s749_s6 = inlined_call_operand.hbm [shape: bf16[16,128], index: 6, kind: output, shape index: {0}]   ;;  %s750_s7 = inlined_call_operand.hbm [shape: f32[8,128], index: 7, kind: output, shape index: {1}]  }
   0x1   :  { %14 = vsyncpa [#allocation6], 0 }
   0x2   :  { %15 = vsyncpa [#allocation4], 0 }
   0x3   :  { %16 = vsyncpa [#allocation9], 0  ;;  %s21_s26 = sshll.u32 %s743_s0, 4  ;;  %s596_s27 = smov [#allocation2]   ;;  %s22_s26 = int_to_ptr.hbm [resolvable:$true] %s21_s26 }
   0x4   :  { %s23_s28 = sshll.u32 %s596_s27, 4  ;;  %s34_s8 = sshll.u32 %s744_s1, 4  ;;  %s24_s28 = int_to_ptr.vmem [resolvable:$true] %s23_s28  ;;  %s35_s8 = int_to_ptr.hbm [resolvable:$true] %s34_s8 }
   0x5   :  { %s597_s9 = smov 64   ;;  %s598_s10 = smov 4  }
   0x6   :  { %29 = dma.hbm_to_vmem [thread:$0]  %s22_s26, 128, %s24_s28, [#allocation3], %s597_s9, %s597_s9, %s598_s10  }
   0x7   :  { %s599_s11 = smov [#allocation5]   ;;  %s600_s13 = smov 192  }
   0x8   :  { %s36_s12 = sshll.u32 %s599_s11, 4  ;;  %s601_s0 = smov 12   ;;  %s37_s12 = int_to_ptr.vmem [resolvable:$true] %s36_s12 }
   0x9   :  { %42 = dma.hbm_to_vmem [thread:$0]  %s35_s8, 768, %s37_s12, [#allocation6], %s600_s13, %s600_s13, %s601_s0  }
   0xa   :  { %588 = dma.done.wait [#allocation3], 128  }
   0xb   :  { %589 = vsyncadd [#allocation3], 4294967168 }
   0xc   :  { %590 = dma.done.wait [#allocation6], 768  }
   0xd   :  { %591 = vsyncadd [#allocation6], 4294966528  ;;  %v442_v0 = vld [vmem:[#allocation5 + $0x1c] sm:$0xf]  ;;  %v427_v1 = vld [vmem:[#allocation5 + $0x24] sm:$0xf0]  ;;  %v155_v19 = vlaneseq }
   0xe   :  { %v433_v2 = vld [vmem:[#allocation5 + $0x20] sm:$0xf]  ;;  %v430_v3 = vor.u32 %v442_v0, %v427_v1  ;;  %v444_v4 = vld [vmem:[#allocation5 + $0x28] sm:$0xf0]  ;;  %v439_v5 = vld [vmem:[#allocation5 + $0x4] sm:$0xf] }
   0xf   :  { %v415_v6 = vld [vmem:[#allocation5 + $0xc] sm:$0xf0]  ;;  %v434_v7 = vor.u32 %v444_v4, %v433_v2  ;;  %v421_v8 = vld [vmem:[#allocation5 + $0x8] sm:$0xf]  ;;  %v441_v9 = vld [vmem:[#allocation5 + $0x10] sm:$0xf0] }
  0x10   :  { %v425_v10 = vld [vmem:[#allocation5 + $0x18] sm:$0xf]  ;;  %133 = vmatpush.bf16.msra.mxu1 %v430_v3  ;;  %v418_v11 = vor.u32 %v439_v5, %v415_v6  ;;  %v443_v12 = vld [vmem:[#allocation5 + $0x20] sm:$0xf0]  ;;  %v413_v13 = vld [vmem:[#allocation5] sm:$0xf]  ;;  %v422_v14 = vor.u32 %v441_v9, %v421_v8 }
  0x11   :  { %147 = vmatpush.bf16.msra.mxu2 %v434_v7  ;;  %v426_v15 = vor.u32 %v443_v12, %v425_v10  ;;  %v440_v16 = vld [vmem:[#allocation5 + $0x8] sm:$0xf0]  ;;  %v438_v17 = vld [vmem:[#allocation2] sm:$0xff]  ;;  %vm109_vm0 = vcmask 261120   ;;  %v655_v20 = vand.u32 127, %v155_v19  ;;  %v602_v41 = vmov 0  }
  0x12   :  { %v414_v18 = vor.u32 %v440_v16, %v413_v13  ;;  %465 = vset.pattern.permute.xlu1 %v602_v41  ;;  %466 = vset.pattern.permute.xlu2 %v602_v41  ;;  %v182_v55 = vld [vmem:[%s747_s4 + $0x8] sm:$0xff]  ;;  %v181_v57 = vld [vmem:[%s747_s4] sm:$0xff]  ;;  %s377_s27 = sshll.u32 %s749_s6, 4  ;;  %s603_s28 = smov [#allocation7]   ;;  %s378_s27 = int_to_ptr.hbm [resolvable:$true] %s377_s27 }
  0x13   :  { %119 = vmatpush.bf16.msra.mxu0 %v426_v15  ;;  %vm203_vm1 = vcmp.lt.s32.totalorder %v655_v20, 16  ;;  %467 = vset.pattern.permute.xlu0 %v602_v41  ;;  %v201_v13 = vld [vmem:[%s745_s2] sm:$0xff]  ;;  %s375_s29 = sshll.u32 %s603_s28, 4  ;;  %s604_s8 = smov [#allocation8]   ;;  %s376_s29 = int_to_ptr.vmem [resolvable:$true] %s375_s29 }
  0x14   :  { %134 = vmatpush.bf16.msra.mxu1 %v418_v11  ;;  %s391_s12 = sshll.u32 %s750_s7, 4  ;;  %s392_s12 = int_to_ptr.hbm [resolvable:$true] %s391_s12 }
  0x15   :  { %148 = vmatpush.bf16.msra.mxu2 %v422_v14 }
  0x17   :  { %436 = vmatmul.msk.bf16.vlgmr.msra.gmra.mxu1 %vm109_vm0, %v438_v17  ;;  %120 = vmatpush.bf16.msra.mxu0 %v414_v18 }
  0x18   :  { %437 = vmatmul.msk.bf16.vlgmr.msra.gmra.mxu2 %vm109_vm0, %v438_v17 }
  0x1a   :  { %435 = vmatmul.msk.bf16.vlgmr.msra.gmra.mxu0 %vm109_vm0, %v438_v17 }
  0x94   :  { %v136_v21 = vpop.f32.mrf.mxu1 }
  0x95   :  { %v204_v22 = vsel %vm203_vm1, %v136_v21, -1e+30 }
  0x96   :  { %206 = vmax.xlane.f32.xlu0 %v204_v22 }
  0x97   :  { %v122_v23 = vpop.f32.mrf.mxu0 }
  0x98   :  { %157 = vmax.xlane.f32.xlu2 %v122_v23 }
  0x9b   :  { %v150_v24 = vpop.f32.mrf.mxu2 }
  0x9c   :  { %v262_v25 = vsel %vm203_vm1, %v150_v24, -1e+30  ;;  %v138_v26 = vpop.f32.mrf.mxu1 }
  0x9d   :  { %264 = vmax.xlane.f32.xlu1 %v262_v25  ;;  %v205_v27 = vsel %vm203_vm1, %v138_v26, -1e+30 }
  0x9e   :  { %208 = vmax.xlane.f32.xlu0 %v205_v27 }
  0x9f   :  { %v124_v28 = vpop.f32.mrf.mxu0 }
  0xa0   :  { %159 = vmax.xlane.f32.xlu2 %v124_v28 }
  0xa3   :  { %v152_v29 = vpop.f32.mrf.mxu2 }
  0xa4   :  { %v263_v30 = vsel %vm203_vm1, %v152_v29, -1e+30 }
  0xa5   :  { %266 = vmax.xlane.f32.xlu1 %v263_v30 }
 0x109   :  { %v207_v31 = vpop.xlane.xlu0 %206 }
 0x10a   :  { %v210_v32 = vsub.f32 %v204_v22, %v207_v31 }
 0x10b   :  { %v158_v42 = vpop.xlane.xlu2 %157 }
 0x10c   :  { %v212_v33 = vmul.f32 1.442695, %v210_v32  ;;  %v666_v48 = vsub.f32 %v122_v23, %v158_v42  ;;  %v260_v42 = vld [vmem:[%s746_s3] sm:$0xff] }
 0x10e   :  { %468 = vpow2.f32 %v212_v33  ;;  %v163_v49 = vmul.f32 1.442695, %v666_v48 }
 0x110   :  { %v265_v34 = vpop.xlane.xlu1 %264 }
 0x111   :  { %v268_v35 = vsub.f32 %v262_v25, %v265_v34  ;;  %v209_v36 = vpop.xlane.xlu0 %208 }
 0x112   :  { %v211_v37 = vsub.f32 %v205_v27, %v209_v36 }
 0x113   :  { %v270_v38 = vmul.f32 1.442695, %v268_v35  ;;  %v160_v50 = vpop.xlane.xlu2 %159 }
 0x114   :  { %v658_v39 = vpop.eup %468  ;;  %v214_v40 = vmul.f32 1.442695, %v211_v37  ;;  %v673_v52 = vsub.f32 %v124_v28, %v160_v50 }
 0x115   :  { %470 = vpow2.f32 %v270_v38  ;;  %216 = vadd.xlane.f32.xlu0 %v658_v39 }
 0x116   :  { %472 = vpow2.f32 %v214_v40  ;;  %v165_v53 = vmul.f32 1.442695, %v673_v52 }
 0x118   :  { %v267_v43 = vpop.xlane.xlu1 %266 }
 0x119   :  { %v269_v44 = vsub.f32 %v263_v30, %v267_v43 }
 0x11b   :  { %v661_v45 = vpop.eup %470  ;;  %v272_v46 = vmul.f32 1.442695, %v269_v44 }
 0x11c   :  { %v663_v47 = vpop.eup %472  ;;  %274 = vadd.xlane.f32.xlu2 %v661_v45 }
 0x11d   :  { %474 = vpow2.f32 %v272_v46  ;;  %218 = vadd.xlane.f32.xlu1 %v663_v47 }
 0x11e   :  { %476 = vpow2.f32 %v163_v49 }
 0x11f   :  { %478 = vpow2.f32 %v165_v53 }
 0x123   :  { %v670_v51 = vpop.eup %474 }
 0x124   :  { %276 = vadd.xlane.f32.xlu0 %v670_v51  ;;  %v477_v54 = vpop.eup %476 }
 0x125   :  { %v479_v56 = vpop.eup %478 }
 0x12c   :  { %167 = vadd.xlane.f32.xlu0 %v477_v54 }
 0x134   :  { %169 = vadd.xlane.f32.xlu0 %v479_v56  ;;  %187 = vperm.xlu2 %466, %v182_v55  }
 0x136   :  { %184 = vperm.xlu1 %465, %v181_v57  }
 0x188   :  { %v217_v58 = vpop.xlane.xlu0 %216 }
 0x189   :  { %480 = vrcp.f32 %v217_v58  ;;  %v231_v1 = vand.u32 2147483648, %v217_v58  ;;  %v229_v2 = vand.u32 2147483647, %v217_v58  ;;  %vm225_vm3 = vweird.f32 %v217_v58 }
 0x18b   :  { %v232_v9 = vor.u32 1.1754944e-38, %v231_v1  ;;  %vm230_vm6 = vcmp.eq.f32.partialorder %v229_v2, 8.507059e+37 }
 0x18f   :  { %v481_v59 = vpop.eup %480  ;;  %v275_v60 = vpop.xlane.xlu2 %274 }
 0x190   :  { %v221_v61 = vmul.f32 %v481_v59, %v217_v58  ;;  %482 = vrcp.f32 %v275_v60  ;;  %v682_v62 = vpop.xlane.xlu1 %218  ;;  %vm226_vm2 = vweird.f32 %v481_v59  ;;  %v289_v26 = vand.u32 2147483648, %v275_v60 }
 0x191   :  { %484 = vrcp.f32 %v682_v62  ;;  %vm227_vm4 = vmor %vm225_vm3, %vm226_vm2  ;;  %vm283_vm8 = vweird.f32 %v275_v60  ;;  %v287_v27 = vand.u32 2147483647, %v275_v60  ;;  %v246_v36 = vand.u32 2147483648, %v682_v62 }
 0x192   :  { %v222_v63 = vsub.f32 1.0, %v221_v61  ;;  %v290_v31 = vor.u32 1.1754944e-38, %v289_v26  ;;  %vm240_vm12 = vweird.f32 %v682_v62 }
 0x193   :  { %vm288_vm10 = vcmp.eq.f32.partialorder %v287_v27, 8.507059e+37  ;;  %v247_v46 = vor.u32 1.1754944e-38, %v246_v36 }
 0x194   :  { %v223_v0 = vmul.f32 %v481_v59, %v222_v63 }
 0x196   :  { %v483_v3 = vpop.eup %482  ;;  %v224_v4 = vadd.f32 %v481_v59, %v223_v0 }
 0x197   :  { %v279_v5 = vmul.f32 %v483_v3, %v275_v60  ;;  %v685_v6 = vpop.xlane.xlu0 %276  ;;  %v188_v7 = vpop.permute.xlu2 %187  ;;  %vm284_vm7 = vweird.f32 %v483_v3 }
 0x198   :  { %v485_v8 = vpop.eup %484  ;;  %vm190_vm5 = vcmp.eq.s32.totalorder %v655_v20, %v188_v7  ;;  %v228_v11 = vsel %vm227_vm4, %v481_v59, %v224_v4  ;;  %486 = vrcp.f32 %v685_v6  ;;  %vm285_vm9 = vmor %vm283_vm8, %vm284_vm7  ;;  %vm298_vm1 = vweird.f32 %v685_v6 }
 0x199   :  { %v280_v10 = vsub.f32 1.0, %v279_v5  ;;  %v192_v12 = vsel %vm190_vm5, %v673_v52, 0.0  ;;  %v233_v14 = vsel %vm230_vm6, %v232_v9, %v228_v11  ;;  %v236_v16 = vmul.f32 %v485_v8, %v682_v62 }
 0x19a   :  { %195 = vadd.xlane.f32.xlu2 %v192_v12  ;;  %v234_v17 = vmul.f32 %v658_v39, %v233_v14  ;;  %vm241_vm11 = vweird.f32 %v485_v8  ;;  %v244_v39 = vand.u32 2147483647, %v682_v62  ;;  %v304_v56 = vand.u32 2147483648, %v685_v6  ;;  %v202_v62 = vld [vmem:[%s745_s2 + $0x8] sm:$0xff] }
 0x19b   :  { %v281_v15 = vmul.f32 %v483_v3, %v280_v10  ;;  %v237_v21 = vsub.f32 1.0, %v236_v16  ;;  %vm242_vm14 = vmor %vm240_vm12, %vm241_vm11  ;;  %v302_v57 = vand.u32 2147483647, %v685_v6  ;;  %vm318_vm4 = vcmask 7168  }
 0x19c   :  { %v250_v18 = vsub.f32 %v234_v17, %v201_v13  ;;  %vm245_vm15 = vcmp.eq.f32.partialorder %v244_v39, 8.507059e+37  ;;  %v305_v1 = vor.u32 1.1754944e-38, %v304_v56  ;;  %vm358_vm6 = vcmp.eq.s32.totalorder %v655_v20, 0 }
 0x19d   :  { %v282_v24 = vadd.f32 %v483_v3, %v281_v15  ;;  %v238_v28 = vmul.f32 %v485_v8, %v237_v21  ;;  %vm303_vm3 = vcmp.eq.f32.partialorder %v302_v57, 8.507059e+37  ;;  %v356_v57 = vshrl.u32 %v155_v19, 7 }
 0x19e   :  { %v252_v23 = vmul.f32 %v250_v18, %v250_v18  ;;  %v487_v25 = vpop.eup %486  ;;  %vm362_vm7 = vcmp.eq.s32.totalorder %v655_v20, 1  ;;  %vm366_vm8 = vcmp.eq.s32.totalorder %v655_v20, 2 }
 0x19f   :  { %v168_v22 = vpop.xlane.xlu0 %167  ;;  %v294_v29 = vmul.f32 %v487_v25, %v685_v6  ;;  %v286_v30 = vsel %vm285_vm9, %v483_v3, %v282_v24  ;;  %v239_v35 = vadd.f32 %v485_v8, %v238_v28  ;;  %vm299_vm0 = vweird.f32 %v487_v25 }
 0x1a0   :  { %254 = vadd.xlane.f32.xlu1 %v252_v23  ;;  %488 = vlog2.f32 %v168_v22  ;;  %v291_v32 = vsel %vm288_vm10, %v290_v31, %v286_v30  ;;  %vm300_vm2 = vmor %vm298_vm1, %vm299_vm0  ;;  %vm357_vm5 = vcmp.eq.s32.totalorder %v356_v57, 0 }
 0x1a1   :  { %v295_v33 = vsub.f32 1.0, %v294_v29  ;;  %v292_v38 = vmul.f32 %v661_v45, %v291_v32  ;;  %v243_v44 = vsel %vm242_vm14, %v485_v8, %v239_v35  ;;  %v63_v8 = vld [vmem:[%s748_s5 + $0x8] sm:$0xff]  ;;  %vm359_vm9 = vmand %vm357_vm5, %vm358_vm6 }
 0x1a2   :  { %v248_v54 = vsel %vm245_vm15, %v247_v46, %v243_v44  ;;  %vm363_vm10 = vmand %vm357_vm5, %vm362_vm7 }
 0x1a3   :  { %v296_v43 = vmul.f32 %v487_v25, %v295_v33  ;;  %v308_v50 = vsub.f32 %v292_v38, %v260_v42  ;;  %v249_v61 = vmul.f32 %v663_v47, %v248_v54  ;;  %v261_v47 = vld [vmem:[%s746_s3 + $0x8] sm:$0xff]  ;;  %vm367_vm11 = vmand %vm357_vm5, %vm366_vm8 }
 0x1a5   :  { %v297_v55 = vadd.f32 %v487_v25, %v296_v43  ;;  %v310_v60 = vmul.f32 %v308_v50, %v308_v50  ;;  %v251_v2 = vsub.f32 %v249_v61, %v202_v62 }
 0x1a6   :  { %v489_v40 = vpop.eup %488 }
 0x1a7   :  { %v170_v34 = vpop.xlane.xlu0 %169  ;;  %v172_v49 = vmul.f32 0.6931472, %v489_v40  ;;  %v301_v63 = vsel %vm300_vm2, %v487_v25, %v297_v55  ;;  %v253_v4 = vmul.f32 %v251_v2, %v251_v2 }
 0x1a8   :  { %490 = vlog2.f32 %v170_v34  ;;  %v185_v37 = vpop.permute.xlu1 %184  ;;  %v306_v3 = vsel %vm303_vm3, %v305_v1, %v301_v63 }
 0x1a9   :  { %vm189_vm13 = vcmp.eq.s32.totalorder %v655_v20, %v185_v37  ;;  %v175_v58 = vsub.f32 %v666_v48, %v172_v49 }
 0x1aa   :  { %v191_v41 = vsel %vm189_vm13, %v666_v48, 0.0  ;;  %v307_v48 = vmul.f32 %v670_v51, %v306_v3  ;;  %v62_v51 = vld [vmem:[%s748_s5] sm:$0xff] }
 0x1ab   :  { %193 = vadd.xlane.f32.xlu0 %v191_v41 }
 0x1ae   :  { %v491_v53 = vpop.eup %490 }
 0x1af   :  { %v174_v45 = vmul.f32 0.6931472, %v491_v53 }
 0x1b1   :  { %v176_v59 = vsub.f32 %v673_v52, %v174_v45  ;;  %v309_v52 = vsub.f32 %v307_v48, %v261_v47 }
 0x1b3   :  { %312 = vadd.xlane.f32.xlu0 %v310_v60  ;;  %v448_v0 = vpack.c.bf16 %v176_v59, %v175_v58  ;;  %v311_v5 = vmul.f32 %v309_v52, %v309_v52 }
 0x1b5   :  { %449 = vst [vmem:[#allocation7] sm:$0xff] %v448_v0  }
 0x1b6   :  { %383 = dma.vmem_to_hbm [thread:$0]  %s376_s29, 128, %s378_s27, [#allocation4], %s597_s9, %s597_s9, %s598_s10  }
 0x1b7   :  { %s389_s9 = sshll.u32 %s604_s8, 4  ;;  %s390_s9 = int_to_ptr.vmem [resolvable:$true] %s389_s9 }
 0x1bb   :  { %256 = vadd.xlane.f32.xlu0 %v253_v4 }
 0x1c3   :  { %314 = vadd.xlane.f32.xlu0 %v311_v5 }
 0x20d   :  { %v196_v6 = vpop.xlane.xlu2 %195 }
 0x20e   :  { %v198_v7 = vsub.f32 %v174_v45, %v196_v6 }
 0x210   :  { %v200_v10 = vmul.f32 %v198_v7, %v63_v8 }
 0x212   :  { %v320_v14 = vsel %vm318_vm4, %v200_v10, 0.0 }
 0x213   :  { %v255_v17 = vpop.xlane.xlu1 %254 }
 0x214   :  { %v258_v18 = vmul.f32 %v255_v17, %v62_v51 }
 0x216   :  { %v331_v23 = vsel %vm318_vm4, %v258_v18, 0.0 }
 0x21e   :  { %v194_v9 = vpop.xlane.xlu0 %193 }
 0x21f   :  { %v197_v11 = vsub.f32 %v172_v49, %v194_v9 }
 0x221   :  { %v199_v12 = vmul.f32 %v197_v11, %v62_v51 }
 0x223   :  { %v319_v13 = vsel %vm318_vm4, %v199_v12, 0.0 }
 0x224   :  { %v321_v15 = vadd.f32 %v320_v14, %v319_v13 }
 0x226   :  { %v313_v16 = vpop.xlane.xlu0 %312  ;;  %322 = vadd.xlane.f32.xlu0 %v321_v15 }
 0x227   :  { %v316_v26 = vmul.f32 %v313_v16, %v62_v51 }
 0x229   :  { %v343_v29 = vsel %vm318_vm4, %v316_v26, 0.0 }
 0x22e   :  { %v257_v21 = vpop.xlane.xlu0 %256 }
 0x22f   :  { %v259_v22 = vmul.f32 %v257_v21, %v63_v8 }
 0x231   :  { %v332_v24 = vsel %vm318_vm4, %v259_v22, 0.0 }
 0x232   :  { %v333_v25 = vadd.f32 %v332_v24, %v331_v23 }
 0x234   :  { %334 = vadd.xlane.f32.xlu0 %v333_v25 }
 0x236   :  { %v315_v27 = vpop.xlane.xlu0 %314 }
 0x237   :  { %v317_v28 = vmul.f32 %v315_v27, %v63_v8 }
 0x239   :  { %v344_v30 = vsel %vm318_vm4, %v317_v28, 0.0 }
 0x23a   :  { %v345_v31 = vadd.f32 %v344_v30, %v343_v29 }
 0x23c   :  { %346 = vadd.xlane.f32.xlu2 %v345_v31 }
 0x299   :  { %v323_v32 = vpop.xlane.xlu0 %322 }
 0x29a   :  { %v324_v33 = vrot.slane %v323_v32, 4 }
 0x29c   :  { %v325_v34 = vadd.f32 %v324_v33, %v323_v32 }
 0x29e   :  { %v326_v35 = vrot.slane %v325_v34, 2 }
 0x2a0   :  { %v327_v36 = vadd.f32 %v326_v35, %v325_v34 }
 0x2a2   :  { %v328_v37 = vrot.slane %v327_v36, 1 }
 0x2a4   :  { %v329_v38 = vadd.f32 %v328_v37, %v327_v36 }
 0x2a6   :  { %450 = vpush %v329_v38 }
 0x2a7   :  { %v335_v39 = vpop.xlane.xlu0 %334 }
 0x2a8   :  { %v336_v40 = vrot.slane %v335_v39, 4 }
 0x2aa   :  { %v337_v41 = vadd.f32 %v336_v40, %v335_v39 }
 0x2ac   :  { %v338_v42 = vrot.slane %v337_v41, 2 }
 0x2ae   :  { %v339_v43 = vadd.f32 %v338_v42, %v337_v41 }
 0x2af   :  { %v347_v44 = vpop.xlane.xlu2 %346 }
 0x2b0   :  { %v348_v46 = vrot.slane %v347_v44, 4  ;;  %v340_v49 = vrot.slane %v339_v43, 1 }
 0x2b2   :  { %v349_v50 = vadd.f32 %v348_v46, %v347_v44  ;;  %v341_v53 = vadd.f32 %v340_v49, %v339_v43 }
 0x2b4   :  { %v350_v54 = vrot.slane %v349_v50, 2  ;;  %452 = vpush %v341_v53 }
 0x2b6   :  { %v351_v45 = vadd.f32 %v350_v54, %v349_v50 }
 0x2b8   :  { %v352_v55 = vrot.slane %v351_v45, 1 }
 0x2ba   :  { %v353_v56 = vadd.f32 %v352_v55, %v351_v45 }
 0x2bc   :  { %454 = vpush %v353_v56 }
 0x2d7   :  { %s451_s6 = spop %450 }
 0x2d8   :  { %v360_v58 = vstv %s451_s6 }
 0x2d9   :  { %v361_v19 = vsel %vm359_vm9, %v360_v58, 0.0 }
 0x2e5   :  { %s453_s30 = spop %452 }
 0x2e6   :  { %v364_v59 = vstv %s453_s30 }
 0x2e7   :  { %v365_v60 = vsel %vm363_vm10, %v364_v59, %v361_v19 }
 0x2ed   :  { %s455_s13 = spop %454 }
 0x2ee   :  { %v368_v61 = vstv %s455_s13 }
 0x2ef   :  { %v369_v62 = vsel %vm367_vm11, %v368_v61, %v365_v60 }
 0x2f0   :  { %370 = vst [vmem:[#allocation8] sm:$0xff] %v369_v62 }
 0x2f1   :  { %394 = dma.vmem_to_hbm [thread:$0]  %s390_s9, 128, %s392_s12, [#allocation9]  }
 0x2f2   :  { %592 = dma.done.wait [#allocation4], 128  }
 0x2f3   :  { %593 = vsyncadd [#allocation4], 4294967168 }
 0x2f4   :  { %594 = dma.done.wait [#allocation9], 128  }
 0x2f5   :  { %595 = vsyncadd [#allocation9], 4294967168 }
 0x2f6   :  { %403 = vsyncpa [#allocation3], 1 }
 0x2f7   :  { %404 = vsyncpa [#allocation6], 1 }
 0x2f8   :  { %405 = vsyncpa [#allocation4], 1 }
 0x2f9   :  { %406 = vsyncpa [#allocation9], 1 }

</bundles_post_ra>
